<compile_context>
chip_gen: v7x
topology: tpu7x:2x2x1
jax: 0.10.0
libtpu: 0.0.40
codegen_flags: <defaults>
</compile_context>

<pallas_src>
import functools

import jax
import jax.numpy as jnp
from jax import lax
from jax.experimental import pallas as pl
from jax.experimental.pallas import tpu as pltpu
import numpy as np


def lstm_kernel(x_ref, wih_ref, whh_ref, b_ref, wout_ref, bout_ref, out_ref,
                *, seq_len, batch):
    """Full LSTM recurrence + output projection in-kernel.

    x_ref   : (S*B, I)   time-major, batch-flattened input
    wih_ref : (I, 4H)    input->gates weight (transposed; i/f/o columns pre-scaled by 0.5)
    whh_ref : (H, 4H)    hidden->gates weight (transposed; i/f/o columns pre-scaled by 0.5)
    b_ref   : (1, 4H)    b_ih + b_hh fused (i/f/o entries pre-scaled by 0.5)
    wout_ref: (H, O)     output Linear weight (transposed vs. PyTorch)
    bout_ref: (1, O)     output Linear bias
    out_ref : (B, O)     result
    """
    H = whh_ref.shape[0]

    # (1) Input projection for the whole sequence in one MXU matmul, bias
    #     broadcast materialized exactly once.  gx: (S*B, 4H)
    gx = (jnp.dot(x_ref[...], wih_ref[...], preferred_element_type=jnp.float32)
          + b_ref[...])

    # (2) Recurrent weight resident in vregs for the entire recurrence.
    whh = whh_ref[...]

    # (3) h/c carried in registers; recurrence fully unrolled (static S).
    h = jnp.zeros((batch, H), jnp.float32)
    c = jnp.zeros((batch, H), jnp.float32)
    for t in range(seq_len):
        gates = (jnp.dot(h, whh, preferred_element_type=jnp.float32)
                 + gx[t * batch:(t + 1) * batch])          # (B, 4H), static slice
        # Single full-width EUP op: i/f/o columns carry 0.5*z (pre-scaled
        # weights), g column carries z, so
        #   tanh(gates) = [tanh(0.5*z_i), tanh(0.5*z_f), tanh(z_g), tanh(0.5*z_o)]
        # and sigmoid(z) = 0.5*tanh(0.5*z) + 0.5 (exact identity).
        t4 = jnp.tanh(gates)
        # PyTorch gate order: i, f, g, o
        i_g = 0.5 * t4[:, 0 * H:1 * H] + 0.5
        f_g = 0.5 * t4[:, 1 * H:2 * H] + 0.5
        g_g = t4[:, 2 * H:3 * H]
        o_g = 0.5 * t4[:, 3 * H:4 * H] + 0.5
        c = f_g * c + i_g * g_g
        h = o_g * jnp.tanh(c)

    # (4) Output projection on the final hidden state.
    out_ref[...] = (jnp.dot(h, wout_ref[...], preferred_element_type=jnp.float32)
                    + bout_ref[...]).astype(out_ref.dtype)


def prepare_params(params):
    """One-time (outside the jit'd forward) transpose/cast/bias-fusion/pre-scale."""
    w_ih, w_hh, b_ih, b_hh, w_out, b_out = params
    H = w_hh.shape[1]
    O = w_out.shape[0]
    # 0.5 on the sigmoid gates (i, f, o), 1.0 on the tanh gate (g), so the
    # kernel needs a single tanh over the full gate vector per step.
    scale = np.concatenate([np.full(H, 0.5, np.float32),
                            np.full(H, 0.5, np.float32),
                            np.ones(H, np.float32),
                            np.full(H, 0.5, np.float32)])
    scale = jnp.asarray(scale, jnp.float32)                       # (4H,)
    wih_t = jnp.asarray(w_ih.T, jnp.float32) * scale              # (I, 4H)
    whh_t = jnp.asarray(w_hh.T, jnp.float32) * scale              # (H, 4H)
    b = (jnp.asarray(b_ih + b_hh, jnp.float32) * scale).reshape(1, 4 * H)
    wout_t = jnp.asarray(w_out.T, jnp.float32)                    # (H, O)
    bout = jnp.asarray(b_out.reshape(1, O), jnp.float32)          # (1, O)
    return wih_t, whh_t, b, wout_t, bout


@functools.partial(jax.jit, static_argnames=("num_actors", "pred_len"))
def lstm_forward(x, prepped, *, num_actors, pred_len):
    """x: (B, input_size, seq_len)  ->  (B, num_actors, pred_len)."""
    wih_t, whh_t, b, wout_t, bout = prepped
    B, I, S = x.shape
    O = wout_t.shape[1]

    # Glue: permute(0,2,1) from the reference forward, then time-major &
    # batch-flattened so the kernel's input projection is a single matmul.
    x_flat = jnp.transpose(x, (2, 0, 1)).reshape(S * B, I).astype(jnp.float32)

    kernel = functools.partial(lstm_kernel, seq_len=S, batch=B)
    vmem = pl.BlockSpec(memory_space=pltpu.MemorySpace.VMEM)
    out = pl.pallas_call(
        kernel,
        out_shape=jax.ShapeDtypeStruct((B, O), jnp.float32),
        in_specs=[vmem] * 6,
        out_specs=vmem,
    )(x_flat, wih_t, whh_t, b, wout_t, bout)

    # out.view(batch_size, num_actors, pred_len)
    return out.reshape(B, num_actors, pred_len)


def lstm_reference(x, params):
    """Pure-JAX reference (matches PyTorch nn.LSTM(batch_first) + Linear)."""
    w_ih, w_hh, b_ih, b_hh, w_out, b_out = params
    B, I, S = x.shape
    H = w_hh.shape[1]
    xs = jnp.transpose(x, (2, 0, 1))  # (S, B, I)

    def step(carry, x_t):
        h, c = carry
        gates = x_t @ w_ih.T + h @ w_hh.T + b_ih + b_hh
        i_g = jax.nn.sigmoid(gates[:, 0 * H:1 * H])
        f_g = jax.nn.sigmoid(gates[:, 1 * H:2 * H])
        g_g = jnp.tanh(gates[:, 2 * H:3 * H])
        o_g = jax.nn.sigmoid(gates[:, 3 * H:4 * H])
        c = f_g * c + i_g * g_g
        h = o_g * jnp.tanh(c)
        return (h, c), None

    h0 = jnp.zeros((B, H), jnp.float32)
    (hn, _), _ = lax.scan(step, (h0, h0), xs)
    return hn @ w_out.T + b_out


if __name__ == "__main__":
    # Small configuration consistent with the module's forward.
    batch_size = 2
    num_actors = 4          # len(config.role_names)
    num_phases = 3          # len(config.phases)
    input_size = num_actors + num_phases + 2   # 9
    seq_len = 8
    hidden_dim = 32
    pred_len = 8
    output_size = num_actors * pred_len        # 32

    key = jax.random.PRNGKey(0)
    k_x, k1, k2, k3, k4, k5, k6 = jax.random.split(key, 7)

    # Deterministic parameter init (PyTorch LSTM/Linear-style uniform ranges).
    bound = 1.0 / np.sqrt(hidden_dim)
    w_ih = jax.random.uniform(k1, (4 * hidden_dim, input_size),
                              minval=-bound, maxval=bound, dtype=jnp.float32)
    w_hh = jax.random.uniform(k2, (4 * hidden_dim, hidden_dim),
                              minval=-bound, maxval=bound, dtype=jnp.float32)
    b_ih = jax.random.uniform(k3, (4 * hidden_dim,),
                              minval=-bound, maxval=bound, dtype=jnp.float32)
    b_hh = jax.random.uniform(k4, (4 * hidden_dim,),
                              minval=-bound, maxval=bound, dtype=jnp.float32)
    w_out = jax.random.uniform(k5, (output_size, hidden_dim),
                               minval=-bound, maxval=bound, dtype=jnp.float32)
    b_out = jax.random.uniform(k6, (output_size,),
                               minval=-bound, maxval=bound, dtype=jnp.float32)
    params = (w_ih, w_hh, b_ih, b_hh, w_out, b_out)

    # One-time parameter prep (transposes/casts/bias fusion/gate pre-scale)
    # outside the jit'd forward so it does not run as per-call XLA ops.
    prepped = jax.block_until_ready(prepare_params(params))

    # Input: (batch_size, num_actors + num_temporal_features, seq_len)
    x = jax.random.normal(k_x, (batch_size, input_size, seq_len),
                          dtype=jnp.float32)

    out = lstm_forward(x, prepped, num_actors=num_actors, pred_len=pred_len)
    out = jax.block_until_ready(out)
    assert out.shape == (batch_size, num_actors, pred_len)

    ref = lstm_reference(x, params).reshape(batch_size, num_actors, pred_len)
    np.testing.assert_allclose(np.asarray(out), np.asarray(ref),
                               rtol=1e-5, atol=1e-5)

    print("KERNEL_OK")
</pallas_src>

<mosaic_0001>
module attributes {stable_mosaic.version = 11 : i64} {
  func.func @lstm_kernel(%arg0: memref<16x9xf32, #tpu.memory_space<vmem>>, %arg1: memref<9x128xf32, #tpu.memory_space<vmem>>, %arg2: memref<32x128xf32, #tpu.memory_space<vmem>>, %arg3: memref<1x128xf32, #tpu.memory_space<vmem>>, %arg4: memref<32x32xf32, #tpu.memory_space<vmem>>, %arg5: memref<1x32xf32, #tpu.memory_space<vmem>>, %arg6: memref<2x32xf32, #tpu.memory_space<vmem>>) attributes {dimension_semantics = [], scalar_prefetch = 0 : i64, scratch_operands = 0 : i64, tpu.core_type = #tpu.core_type<tc>} {
    %c0 = arith.constant 0 : index
    %c0_0 = arith.constant 0 : index
    %0 = vector.load %arg0[%c0, %c0_0] : memref<16x9xf32, #tpu.memory_space<vmem>>, vector<16x9xf32>
    %c0_1 = arith.constant 0 : index
    %c0_2 = arith.constant 0 : index
    %1 = vector.load %arg1[%c0_1, %c0_2] : memref<9x128xf32, #tpu.memory_space<vmem>>, vector<9x128xf32>
    %cst = arith.constant dense<0.000000e+00> : vector<16x128xf32>
    %2 = tpu.matmul %0, %1, %cst {dimension_numbers = #tpu.dot_dimension_numbers<[1], [0], [0], [1], [0, 0, 1, 1], [], []>} : vector<16x9xf32>, vector<9x128xf32>, vector<16x128xf32> -> vector<16x128xf32>
    %c0_3 = arith.constant 0 : index
    %c0_4 = arith.constant 0 : index
    %3 = vector.load %arg3[%c0_3, %c0_4] : memref<1x128xf32, #tpu.memory_space<vmem>>, vector<1x128xf32>
    %4 = vector.broadcast %3 : vector<1x128xf32> to vector<16x128xf32>
    %5 = arith.addf %2, %4 : vector<16x128xf32>
    %c0_5 = arith.constant 0 : index
    %c0_6 = arith.constant 0 : index
    %6 = vector.load %arg2[%c0_5, %c0_6] : memref<32x128xf32, #tpu.memory_space<vmem>>, vector<32x128xf32>
    %cst_7 = arith.constant 0.000000e+00 : f32
    %7 = vector.broadcast %cst_7 : f32 to vector<2x32xf32>
    %cst_8 = arith.constant 0.000000e+00 : f32
    %8 = vector.broadcast %cst_8 : f32 to vector<2x32xf32>
    %cst_9 = arith.constant dense<0.000000e+00> : vector<2x128xf32>
    %9 = tpu.matmul %7, %6, %cst_9 {dimension_numbers = #tpu.dot_dimension_numbers<[1], [0], [0], [1], [0, 0, 1, 1], [], []>} : vector<2x32xf32>, vector<32x128xf32>, vector<2x128xf32> -> vector<2x128xf32>
    %10 = vector.extract_strided_slice %5 {offsets = [0, 0], sizes = [2, 128], strides = [1, 1]} : vector<16x128xf32> to vector<2x128xf32>
    %11 = arith.addf %9, %10 : vector<2x128xf32>
    %12 = math.tanh %11 : vector<2x128xf32>
    %13 = vector.extract_strided_slice %12 {offsets = [0, 0], sizes = [2, 32], strides = [1, 1]} : vector<2x128xf32> to vector<2x32xf32>
    %cst_10 = arith.constant 5.000000e-01 : f32
    %14 = vector.broadcast %cst_10 : f32 to vector<2x32xf32>
    %15 = arith.mulf %14, %13 : vector<2x32xf32>
    %cst_11 = arith.constant 5.000000e-01 : f32
    %16 = vector.broadcast %cst_11 : f32 to vector<2x32xf32>
    %17 = arith.addf %15, %16 : vector<2x32xf32>
    %18 = vector.extract_strided_slice %12 {offsets = [0, 32], sizes = [2, 32], strides = [1, 1]} : vector<2x128xf32> to vector<2x32xf32>
    %cst_12 = arith.constant 5.000000e-01 : f32
    %19 = vector.broadcast %cst_12 : f32 to vector<2x32xf32>
    %20 = arith.mulf %19, %18 : vector<2x32xf32>
    %cst_13 = arith.constant 5.000000e-01 : f32
    %21 = vector.broadcast %cst_13 : f32 to vector<2x32xf32>
    %22 = arith.addf %20, %21 : vector<2x32xf32>
    %23 = vector.extract_strided_slice %12 {offsets = [0, 64], sizes = [2, 32], strides = [1, 1]} : vector<2x128xf32> to vector<2x32xf32>
    %24 = vector.extract_strided_slice %12 {offsets = [0, 96], sizes = [2, 32], strides = [1, 1]} : vector<2x128xf32> to vector<2x32xf32>
    %cst_14 = arith.constant 5.000000e-01 : f32
    %25 = vector.broadcast %cst_14 : f32 to vector<2x32xf32>
    %26 = arith.mulf %25, %24 : vector<2x32xf32>
    %cst_15 = arith.constant 5.000000e-01 : f32
    %27 = vector.broadcast %cst_15 : f32 to vector<2x32xf32>
    %28 = arith.addf %26, %27 : vector<2x32xf32>
    %29 = arith.mulf %22, %8 : vector<2x32xf32>
    %30 = arith.mulf %17, %23 : vector<2x32xf32>
    %31 = arith.addf %29, %30 : vector<2x32xf32>
    %32 = math.tanh %31 : vector<2x32xf32>
    %33 = arith.mulf %28, %32 : vector<2x32xf32>
    %cst_16 = arith.constant dense<0.000000e+00> : vector<2x128xf32>
    %34 = tpu.matmul %33, %6, %cst_16 {dimension_numbers = #tpu.dot_dimension_numbers<[1], [0], [0], [1], [0, 0, 1, 1], [], []>} : vector<2x32xf32>, vector<32x128xf32>, vector<2x128xf32> -> vector<2x128xf32>
    %35 = vector.extract_strided_slice %5 {offsets = [2, 0], sizes = [2, 128], strides = [1, 1]} : vector<16x128xf32> to vector<2x128xf32>
    %36 = arith.addf %34, %35 : vector<2x128xf32>
    %37 = math.tanh %36 : vector<2x128xf32>
    %38 = vector.extract_strided_slice %37 {offsets = [0, 0], sizes = [2, 32], strides = [1, 1]} : vector<2x128xf32> to vector<2x32xf32>
    %cst_17 = arith.constant 5.000000e-01 : f32
    %39 = vector.broadcast %cst_17 : f32 to vector<2x32xf32>
    %40 = arith.mulf %39, %38 : vector<2x32xf32>
    %cst_18 = arith.constant 5.000000e-01 : f32
    %41 = vector.broadcast %cst_18 : f32 to vector<2x32xf32>
    %42 = arith.addf %40, %41 : vector<2x32xf32>
    %43 = vector.extract_strided_slice %37 {offsets = [0, 32], sizes = [2, 32], strides = [1, 1]} : vector<2x128xf32> to vector<2x32xf32>
    %cst_19 = arith.constant 5.000000e-01 : f32
    %44 = vector.broadcast %cst_19 : f32 to vector<2x32xf32>
    %45 = arith.mulf %44, %43 : vector<2x32xf32>
    %cst_20 = arith.constant 5.000000e-01 : f32
    %46 = vector.broadcast %cst_20 : f32 to vector<2x32xf32>
    %47 = arith.addf %45, %46 : vector<2x32xf32>
    %48 = vector.extract_strided_slice %37 {offsets = [0, 64], sizes = [2, 32], strides = [1, 1]} : vector<2x128xf32> to vector<2x32xf32>
    %49 = vector.extract_strided_slice %37 {offsets = [0, 96], sizes = [2, 32], strides = [1, 1]} : vector<2x128xf32> to vector<2x32xf32>
    %cst_21 = arith.constant 5.000000e-01 : f32
    %50 = vector.broadcast %cst_21 : f32 to vector<2x32xf32>
    %51 = arith.mulf %50, %49 : vector<2x32xf32>
    %cst_22 = arith.constant 5.000000e-01 : f32
    %52 = vector.broadcast %cst_22 : f32 to vector<2x32xf32>
    %53 = arith.addf %51, %52 : vector<2x32xf32>
    %54 = arith.mulf %47, %31 : vector<2x32xf32>
    %55 = arith.mulf %42, %48 : vector<2x32xf32>
    %56 = arith.addf %54, %55 : vector<2x32xf32>
    %57 = math.tanh %56 : vector<2x32xf32>
    %58 = arith.mulf %53, %57 : vector<2x32xf32>
    %cst_23 = arith.constant dense<0.000000e+00> : vector<2x128xf32>
    %59 = tpu.matmul %58, %6, %cst_23 {dimension_numbers = #tpu.dot_dimension_numbers<[1], [0], [0], [1], [0, 0, 1, 1], [], []>} : vector<2x32xf32>, vector<32x128xf32>, vector<2x128xf32> -> vector<2x128xf32>
    %60 = vector.extract_strided_slice %5 {offsets = [4, 0], sizes = [2, 128], strides = [1, 1]} : vector<16x128xf32> to vector<2x128xf32>
    %61 = arith.addf %59, %60 : vector<2x128xf32>
    %62 = math.tanh %61 : vector<2x128xf32>
    %63 = vector.extract_strided_slice %62 {offsets = [0, 0], sizes = [2, 32], strides = [1, 1]} : vector<2x128xf32> to vector<2x32xf32>
    %cst_24 = arith.constant 5.000000e-01 : f32
    %64 = vector.broadcast %cst_24 : f32 to vector<2x32xf32>
    %65 = arith.mulf %64, %63 : vector<2x32xf32>
    %cst_25 = arith.constant 5.000000e-01 : f32
    %66 = vector.broadcast %cst_25 : f32 to vector<2x32xf32>
    %67 = arith.addf %65, %66 : vector<2x32xf32>
    %68 = vector.extract_strided_slice %62 {offsets = [0, 32], sizes = [2, 32], strides = [1, 1]} : vector<2x128xf32> to vector<2x32xf32>
    %cst_26 = arith.constant 5.000000e-01 : f32
    %69 = vector.broadcast %cst_26 : f32 to vector<2x32xf32>
    %70 = arith.mulf %69, %68 : vector<2x32xf32>
    %cst_27 = arith.constant 5.000000e-01 : f32
    %71 = vector.broadcast %cst_27 : f32 to vector<2x32xf32>
    %72 = arith.addf %70, %71 : vector<2x32xf32>
    %73 = vector.extract_strided_slice %62 {offsets = [0, 64], sizes = [2, 32], strides = [1, 1]} : vector<2x128xf32> to vector<2x32xf32>
    %74 = vector.extract_strided_slice %62 {offsets = [0, 96], sizes = [2, 32], strides = [1, 1]} : vector<2x128xf32> to vector<2x32xf32>
    %cst_28 = arith.constant 5.000000e-01 : f32
    %75 = vector.broadcast %cst_28 : f32 to vector<2x32xf32>
    %76 = arith.mulf %75, %74 : vector<2x32xf32>
    %cst_29 = arith.constant 5.000000e-01 : f32
    %77 = vector.broadcast %cst_29 : f32 to vector<2x32xf32>
    %78 = arith.addf %76, %77 : vector<2x32xf32>
    %79 = arith.mulf %72, %56 : vector<2x32xf32>
    %80 = arith.mulf %67, %73 : vector<2x32xf32>
    %81 = arith.addf %79, %80 : vector<2x32xf32>
    %82 = math.tanh %81 : vector<2x32xf32>
    %83 = arith.mulf %78, %82 : vector<2x32xf32>
    %cst_30 = arith.constant dense<0.000000e+00> : vector<2x128xf32>
    %84 = tpu.matmul %83, %6, %cst_30 {dimension_numbers = #tpu.dot_dimension_numbers<[1], [0], [0], [1], [0, 0, 1, 1], [], []>} : vector<2x32xf32>, vector<32x128xf32>, vector<2x128xf32> -> vector<2x128xf32>
    %85 = vector.extract_strided_slice %5 {offsets = [6, 0], sizes = [2, 128], strides = [1, 1]} : vector<16x128xf32> to vector<2x128xf32>
    %86 = arith.addf %84, %85 : vector<2x128xf32>
    %87 = math.tanh %86 : vector<2x128xf32>
    %88 = vector.extract_strided_slice %87 {offsets = [0, 0], sizes = [2, 32], strides = [1, 1]} : vector<2x128xf32> to vector<2x32xf32>
    %cst_31 = arith.constant 5.000000e-01 : f32
    %89 = vector.broadcast %cst_31 : f32 to vector<2x32xf32>
    %90 = arith.mulf %89, %88 : vector<2x32xf32>
    %cst_32 = arith.constant 5.000000e-01 : f32
    %91 = vector.broadcast %cst_32 : f32 to vector<2x32xf32>
    %92 = arith.addf %90, %91 : vector<2x32xf32>
    %93 = vector.extract_strided_slice %87 {offsets = [0, 32], sizes = [2, 32], strides = [1, 1]} : vector<2x128xf32> to vector<2x32xf32>
    %cst_33 = arith.constant 5.000000e-01 : f32
    %94 = vector.broadcast %cst_33 : f32 to vector<2x32xf32>
    %95 = arith.mulf %94, %93 : vector<2x32xf32>
    %cst_34 = arith.constant 5.000000e-01 : f32
    %96 = vector.broadcast %cst_34 : f32 to vector<2x32xf32>
    %97 = arith.addf %95, %96 : vector<2x32xf32>
    %98 = vector.extract_strided_slice %87 {offsets = [0, 64], sizes = [2, 32], strides = [1, 1]} : vector<2x128xf32> to vector<2x32xf32>
    %99 = vector.extract_strided_slice %87 {offsets = [0, 96], sizes = [2, 32], strides = [1, 1]} : vector<2x128xf32> to vector<2x32xf32>
    %cst_35 = arith.constant 5.000000e-01 : f32
    %100 = vector.broadcast %cst_35 : f32 to vector<2x32xf32>
    %101 = arith.mulf %100, %99 : vector<2x32xf32>
    %cst_36 = arith.constant 5.000000e-01 : f32
    %102 = vector.broadcast %cst_36 : f32 to vector<2x32xf32>
    %103 = arith.addf %101, %102 : vector<2x32xf32>
    %104 = arith.mulf %97, %81 : vector<2x32xf32>
    %105 = arith.mulf %92, %98 : vector<2x32xf32>
    %106 = arith.addf %104, %105 : vector<2x32xf32>
    %107 = math.tanh %106 : vector<2x32xf32>
    %108 = arith.mulf %103, %107 : vector<2x32xf32>
    %cst_37 = arith.constant dense<0.000000e+00> : vector<2x128xf32>
    %109 = tpu.matmul %108, %6, %cst_37 {dimension_numbers = #tpu.dot_dimension_numbers<[1], [0], [0], [1], [0, 0, 1, 1], [], []>} : vector<2x32xf32>, vector<32x128xf32>, vector<2x128xf32> -> vector<2x128xf32>
    %110 = vector.extract_strided_slice %5 {offsets = [8, 0], sizes = [2, 128], strides = [1, 1]} : vector<16x128xf32> to vector<2x128xf32>
    %111 = arith.addf %109, %110 : vector<2x128xf32>
    %112 = math.tanh %111 : vector<2x128xf32>
    %113 = vector.extract_strided_slice %112 {offsets = [0, 0], sizes = [2, 32], strides = [1, 1]} : vector<2x128xf32> to vector<2x32xf32>
    %cst_38 = arith.constant 5.000000e-01 : f32
    %114 = vector.broadcast %cst_38 : f32 to vector<2x32xf32>
    %115 = arith.mulf %114, %113 : vector<2x32xf32>
    %cst_39 = arith.constant 5.000000e-01 : f32
    %116 = vector.broadcast %cst_39 : f32 to vector<2x32xf32>
    %117 = arith.addf %115, %116 : vector<2x32xf32>
    %118 = vector.extract_strided_slice %112 {offsets = [0, 32], sizes = [2, 32], strides = [1, 1]} : vector<2x128xf32> to vector<2x32xf32>
    %cst_40 = arith.constant 5.000000e-01 : f32
    %119 = vector.broadcast %cst_40 : f32 to vector<2x32xf32>
    %120 = arith.mulf %119, %118 : vector<2x32xf32>
    %cst_41 = arith.constant 5.000000e-01 : f32
    %121 = vector.broadcast %cst_41 : f32 to vector<2x32xf32>
    %122 = arith.addf %120, %121 : vector<2x32xf32>
    %123 = vector.extract_strided_slice %112 {offsets = [0, 64], sizes = [2, 32], strides = [1, 1]} : vector<2x128xf32> to vector<2x32xf32>
    %124 = vector.extract_strided_slice %112 {offsets = [0, 96], sizes = [2, 32], strides = [1, 1]} : vector<2x128xf32> to vector<2x32xf32>
    %cst_42 = arith.constant 5.000000e-01 : f32
    %125 = vector.broadcast %cst_42 : f32 to vector<2x32xf32>
    %126 = arith.mulf %125, %124 : vector<2x32xf32>
    %cst_43 = arith.constant 5.000000e-01 : f32
    %127 = vector.broadcast %cst_43 : f32 to vector<2x32xf32>
    %128 = arith.addf %126, %127 : vector<2x32xf32>
    %129 = arith.mulf %122, %106 : vector<2x32xf32>
    %130 = arith.mulf %117, %123 : vector<2x32xf32>
    %131 = arith.addf %129, %130 : vector<2x32xf32>
    %132 = math.tanh %131 : vector<2x32xf32>
    %133 = arith.mulf %128, %132 : vector<2x32xf32>
    %cst_44 = arith.constant dense<0.000000e+00> : vector<2x128xf32>
    %134 = tpu.matmul %133, %6, %cst_44 {dimension_numbers = #tpu.dot_dimension_numbers<[1], [0], [0], [1], [0, 0, 1, 1], [], []>} : vector<2x32xf32>, vector<32x128xf32>, vector<2x128xf32> -> vector<2x128xf32>
    %135 = vector.extract_strided_slice %5 {offsets = [10, 0], sizes = [2, 128], strides = [1, 1]} : vector<16x128xf32> to vector<2x128xf32>
    %136 = arith.addf %134, %135 : vector<2x128xf32>
    %137 = math.tanh %136 : vector<2x128xf32>
    %138 = vector.extract_strided_slice %137 {offsets = [0, 0], sizes = [2, 32], strides = [1, 1]} : vector<2x128xf32> to vector<2x32xf32>
    %cst_45 = arith.constant 5.000000e-01 : f32
    %139 = vector.broadcast %cst_45 : f32 to vector<2x32xf32>
    %140 = arith.mulf %139, %138 : vector<2x32xf32>
    %cst_46 = arith.constant 5.000000e-01 : f32
    %141 = vector.broadcast %cst_46 : f32 to vector<2x32xf32>
    %142 = arith.addf %140, %141 : vector<2x32xf32>
    %143 = vector.extract_strided_slice %137 {offsets = [0, 32], sizes = [2, 32], strides = [1, 1]} : vector<2x128xf32> to vector<2x32xf32>
    %cst_47 = arith.constant 5.000000e-01 : f32
    %144 = vector.broadcast %cst_47 : f32 to vector<2x32xf32>
    %145 = arith.mulf %144, %143 : vector<2x32xf32>
    %cst_48 = arith.constant 5.000000e-01 : f32
    %146 = vector.broadcast %cst_48 : f32 to vector<2x32xf32>
    %147 = arith.addf %145, %146 : vector<2x32xf32>
    %148 = vector.extract_strided_slice %137 {offsets = [0, 64], sizes = [2, 32], strides = [1, 1]} : vector<2x128xf32> to vector<2x32xf32>
    %149 = vector.extract_strided_slice %137 {offsets = [0, 96], sizes = [2, 32], strides = [1, 1]} : vector<2x128xf32> to vector<2x32xf32>
    %cst_49 = arith.constant 5.000000e-01 : f32
    %150 = vector.broadcast %cst_49 : f32 to vector<2x32xf32>
    %151 = arith.mulf %150, %149 : vector<2x32xf32>
    %cst_50 = arith.constant 5.000000e-01 : f32
    %152 = vector.broadcast %cst_50 : f32 to vector<2x32xf32>
    %153 = arith.addf %151, %152 : vector<2x32xf32>
    %154 = arith.mulf %147, %131 : vector<2x32xf32>
    %155 = arith.mulf %142, %148 : vector<2x32xf32>
    %156 = arith.addf %154, %155 : vector<2x32xf32>
    %157 = math.tanh %156 : vector<2x32xf32>
    %158 = arith.mulf %153, %157 : vector<2x32xf32>
    %cst_51 = arith.constant dense<0.000000e+00> : vector<2x128xf32>
    %159 = tpu.matmul %158, %6, %cst_51 {dimension_numbers = #tpu.dot_dimension_numbers<[1], [0], [0], [1], [0, 0, 1, 1], [], []>} : vector<2x32xf32>, vector<32x128xf32>, vector<2x128xf32> -> vector<2x128xf32>
    %160 = vector.extract_strided_slice %5 {offsets = [12, 0], sizes = [2, 128], strides = [1, 1]} : vector<16x128xf32> to vector<2x128xf32>
    %161 = arith.addf %159, %160 : vector<2x128xf32>
    %162 = math.tanh %161 : vector<2x128xf32>
    %163 = vector.extract_strided_slice %162 {offsets = [0, 0], sizes = [2, 32], strides = [1, 1]} : vector<2x128xf32> to vector<2x32xf32>
    %cst_52 = arith.constant 5.000000e-01 : f32
    %164 = vector.broadcast %cst_52 : f32 to vector<2x32xf32>
    %165 = arith.mulf %164, %163 : vector<2x32xf32>
    %cst_53 = arith.constant 5.000000e-01 : f32
    %166 = vector.broadcast %cst_53 : f32 to vector<2x32xf32>
    %167 = arith.addf %165, %166 : vector<2x32xf32>
    %168 = vector.extract_strided_slice %162 {offsets = [0, 32], sizes = [2, 32], strides = [1, 1]} : vector<2x128xf32> to vector<2x32xf32>
    %cst_54 = arith.constant 5.000000e-01 : f32
    %169 = vector.broadcast %cst_54 : f32 to vector<2x32xf32>
    %170 = arith.mulf %169, %168 : vector<2x32xf32>
    %cst_55 = arith.constant 5.000000e-01 : f32
    %171 = vector.broadcast %cst_55 : f32 to vector<2x32xf32>
    %172 = arith.addf %170, %171 : vector<2x32xf32>
    %173 = vector.extract_strided_slice %162 {offsets = [0, 64], sizes = [2, 32], strides = [1, 1]} : vector<2x128xf32> to vector<2x32xf32>
    %174 = vector.extract_strided_slice %162 {offsets = [0, 96], sizes = [2, 32], strides = [1, 1]} : vector<2x128xf32> to vector<2x32xf32>
    %cst_56 = arith.constant 5.000000e-01 : f32
    %175 = vector.broadcast %cst_56 : f32 to vector<2x32xf32>
    %176 = arith.mulf %175, %174 : vector<2x32xf32>
    %cst_57 = arith.constant 5.000000e-01 : f32
    %177 = vector.broadcast %cst_57 : f32 to vector<2x32xf32>
    %178 = arith.addf %176, %177 : vector<2x32xf32>
    %179 = arith.mulf %172, %156 : vector<2x32xf32>
    %180 = arith.mulf %167, %173 : vector<2x32xf32>
    %181 = arith.addf %179, %180 : vector<2x32xf32>
    %182 = math.tanh %181 : vector<2x32xf32>
    %183 = arith.mulf %178, %182 : vector<2x32xf32>
    %cst_58 = arith.constant dense<0.000000e+00> : vector<2x128xf32>
    %184 = tpu.matmul %183, %6, %cst_58 {dimension_numbers = #tpu.dot_dimension_numbers<[1], [0], [0], [1], [0, 0, 1, 1], [], []>} : vector<2x32xf32>, vector<32x128xf32>, vector<2x128xf32> -> vector<2x128xf32>
    %185 = vector.extract_strided_slice %5 {offsets = [14, 0], sizes = [2, 128], strides = [1, 1]} : vector<16x128xf32> to vector<2x128xf32>
    %186 = arith.addf %184, %185 : vector<2x128xf32>
    %187 = math.tanh %186 : vector<2x128xf32>
    %188 = vector.extract_strided_slice %187 {offsets = [0, 0], sizes = [2, 32], strides = [1, 1]} : vector<2x128xf32> to vector<2x32xf32>
    %cst_59 = arith.constant 5.000000e-01 : f32
    %189 = vector.broadcast %cst_59 : f32 to vector<2x32xf32>
    %190 = arith.mulf %189, %188 : vector<2x32xf32>
    %cst_60 = arith.constant 5.000000e-01 : f32
    %191 = vector.broadcast %cst_60 : f32 to vector<2x32xf32>
    %192 = arith.addf %190, %191 : vector<2x32xf32>
    %193 = vector.extract_strided_slice %187 {offsets = [0, 32], sizes = [2, 32], strides = [1, 1]} : vector<2x128xf32> to vector<2x32xf32>
    %cst_61 = arith.constant 5.000000e-01 : f32
    %194 = vector.broadcast %cst_61 : f32 to vector<2x32xf32>
    %195 = arith.mulf %194, %193 : vector<2x32xf32>
    %cst_62 = arith.constant 5.000000e-01 : f32
    %196 = vector.broadcast %cst_62 : f32 to vector<2x32xf32>
    %197 = arith.addf %195, %196 : vector<2x32xf32>
    %198 = vector.extract_strided_slice %187 {offsets = [0, 64], sizes = [2, 32], strides = [1, 1]} : vector<2x128xf32> to vector<2x32xf32>
    %199 = vector.extract_strided_slice %187 {offsets = [0, 96], sizes = [2, 32], strides = [1, 1]} : vector<2x128xf32> to vector<2x32xf32>
    %cst_63 = arith.constant 5.000000e-01 : f32
    %200 = vector.broadcast %cst_63 : f32 to vector<2x32xf32>
    %201 = arith.mulf %200, %199 : vector<2x32xf32>
    %cst_64 = arith.constant 5.000000e-01 : f32
    %202 = vector.broadcast %cst_64 : f32 to vector<2x32xf32>
    %203 = arith.addf %201, %202 : vector<2x32xf32>
    %204 = arith.mulf %197, %181 : vector<2x32xf32>
    %205 = arith.mulf %192, %198 : vector<2x32xf32>
    %206 = arith.addf %204, %205 : vector<2x32xf32>
    %207 = math.tanh %206 : vector<2x32xf32>
    %208 = arith.mulf %203, %207 : vector<2x32xf32>
    %c0_65 = arith.constant 0 : index
    %c0_66 = arith.constant 0 : index
    %209 = vector.load %arg4[%c0_65, %c0_66] : memref<32x32xf32, #tpu.memory_space<vmem>>, vector<32x32xf32>
    %cst_67 = arith.constant dense<0.000000e+00> : vector<2x32xf32>
    %210 = tpu.matmul %208, %209, %cst_67 {dimension_numbers = #tpu.dot_dimension_numbers<[1], [0], [0], [1], [0, 0, 1, 1], [], []>} : vector<2x32xf32>, vector<32x32xf32>, vector<2x32xf32> -> vector<2x32xf32>
    %c0_68 = arith.constant 0 : index
    %c0_69 = arith.constant 0 : index
    %211 = vector.load %arg5[%c0_68, %c0_69] : memref<1x32xf32, #tpu.memory_space<vmem>>, vector<1x32xf32>
    %212 = vector.broadcast %211 : vector<1x32xf32> to vector<2x32xf32>
    %213 = arith.addf %210, %212 : vector<2x32xf32>
    %c0_70 = arith.constant 0 : index
    %c0_71 = arith.constant 0 : index
    %214 = vector.load %arg6[%c0_70, %c0_71] : memref<2x32xf32, #tpu.memory_space<vmem>>, vector<2x32xf32>
    tpu.vector_store %arg6[%c0_70, %c0_71], %213 {strides = array<i32>} : memref<2x32xf32, #tpu.memory_space<vmem>>, vector<2x32xf32>,
    return
  }
}

</mosaic_0001>

<bundles_post_ra>
// kernel: lstm_forward.1
= control target key start
LH: loop header
LB: loop body
LE: loop exit
PB: predicated region body
PF: predicated region fallthrough
CT: control target
= control target key end

     0   :  { %11 = vsyncpa [#allocation3], 0  ;;  %s1544_s0 = inlined_call_operand.vmem [shape: f32[16,9], index: 0, kind: input, shape index: {}]   ;;  %s1545_s1 = inlined_call_operand.hbm [shape: f32[9,128], index: 1, kind: input, shape index: {}]   ;;  %s1546_s2 = inlined_call_operand.vmem [shape: f32[32,128], index: 2, kind: input, shape index: {}]   ;;  %s1547_s3 = inlined_call_operand.vmem [shape: f32[1,128], index: 3, kind: input, shape index: {}]   ;;  %s1548_s4 = inlined_call_operand.hbm [shape: f32[32,32], index: 4, kind: input, shape index: {}]   ;;  %s1549_s5 = inlined_call_operand.vmem [shape: f32[1,32], index: 5, kind: input, shape index: {}]   ;;  %s1550_s6 = inlined_call_operand.vmem [shape: f32[2,32], index: 6, kind: output, shape index: {}]  }
   0x1   :  { %12 = vsyncpa [#allocation5], 0  ;;  %s1337_s21 = smov [#allocation2]   ;;  %s1289_s25 = scalar_lea.hbm %s1545_s1, 256 }
   0x2   :  { %s20_s22 = sshll.u32 %s1337_s21, 4  ;;  %p1290_p0 = scmp.ne.s32.totalorder %s1545_s1, %s1289_s25  ;;  %s21_s22 = int_to_ptr.vmem [resolvable:$true] %s20_s22 }
   0x3   :  { %p1293_p1 = scmp.lt.u32.totalorder %s1289_s25, %s1545_s1 }
   0x5   :  { %p1295_p2 = pnand %p1293_p1, %p1290_p0 }
   0x7   :  { %1298 = shalt.err (!%p1295_p2)
}
   0x8   :  { %s1299_s30 = scalar_lea.vmem %s21_s22, 256  ;;  %p1304_p4 = scmp.lt.s32.totalorder %s21_s22, %s21_s22 }
   0x9   :  { %p1300_p3 = scmp.ne.s32.totalorder %s21_s22, %s1299_s30  ;;  %p1305_p5 = scmp.lt.s32.totalorder %s1299_s30, %s1299_s30 }
   0xb   :  { %p1306_p6 = por %p1305_p5, %p1304_p4 }
   0xd   :  { %p1307_p7 = pnand %p1306_p6, %p1300_p3 }
   0xf   :  { %1310 = shalt.err (!%p1307_p7)
}
  0x10   :  { %s1338_s7 = smov 128   ;;  %s1339_s8 = smov 8  }
  0x11   :  { %26 = dma.hbm_to_vmem [thread:$0]  %s1545_s1, 256, %s21_s22, [#allocation3], %s1338_s7, %s1338_s7, %s1339_s8  }
  0x12   :  { %s1340_s11 = smov [#allocation4]   ;;  %s1311_s15 = scalar_lea.hbm %s1548_s4, 512 }
  0x13   :  { %s36_s12 = sshll.u32 %s1340_s11, 4  ;;  %p1312_p8 = scmp.ne.s32.totalorder %s1548_s4, %s1311_s15  ;;  %s37_s12 = int_to_ptr.vmem [resolvable:$true] %s36_s12 }
  0x14   :  { %p1315_p9 = scmp.lt.u32.totalorder %s1311_s15, %s1548_s4 }
  0x16   :  { %p1317_p10 = pnand %p1315_p9, %p1312_p8 }
  0x18   :  { %1320 = shalt.err (!%p1317_p10)
}
  0x19   :  { %s1321_s20 = scalar_lea.vmem %s37_s12, 512  ;;  %p1326_p12 = scmp.lt.s32.totalorder %s37_s12, %s37_s12 }
  0x1a   :  { %p1322_p11 = scmp.ne.s32.totalorder %s37_s12, %s1321_s20  ;;  %p1327_p13 = scmp.lt.s32.totalorder %s1321_s20, %s1321_s20 }
  0x1c   :  { %p1328_p0 = por %p1327_p13, %p1326_p12 }
  0x1e   :  { %p1329_p1 = pnand %p1328_p0, %p1322_p11 }
  0x20   :  { %1332 = shalt.err (!%p1329_p1)
}
  0x21   :  { %42 = dma.hbm_to_vmem [thread:$0]  %s1548_s4, 512, %s37_s12, [#allocation5], %s1338_s7, %s1338_s7, %s1339_s8  }
  0x22   :  { %1333 = dma.done.wait [#allocation3], 256  }
  0x23   :  { %1334 = vsyncadd [#allocation3], 4294967040 }
  0x24   :  { %1335 = dma.done.wait [#allocation5], 512  }
  0x25   :  { %1336 = vsyncadd [#allocation5], 4294966784  ;;  %v1341_v0 = vmov 0.0|0.0   ;;  %vm1342_vm0 = vmmov 0   ;;  %v1343_v1 = vmov 0.0   ;;  %vm69_vm1 = vcmask 1040384  }
  0x26   :  { %1193 = vmatprep.subr.bf16.mxu1 %v1341_v0  ;;  %1096 = vmatprep.mubr.msk.f32.mxu1 %vm1342_vm0, %v1343_v1  ;;  %vm1344_vm2 = vmmov 1   ;;  %vm62_vm4 = vcmask 72704   ;;  %v53_v2 = vld [vmem:[#allocation2] sm:$0xff]  ;;  %v54_v3 = vld [vmem:[#allocation2 + $0x8] sm:$0x1]  ;;  %v150_v9 = vld [vmem:[%s1546_s2 + $0x10] sm:$0xff] }
  0x27   :  { %vm1188_vm3 = vmpackc.low %vm69_vm1, %vm1344_vm2  ;;  %v148_v4 = vld [vmem:[%s1546_s2] sm:$0xff]  ;;  %v1187_v5 = vpack.c.bf16 %v54_v3, %v53_v2  ;;  %v149_v6 = vld [vmem:[%s1546_s2 + $0x8] sm:$0xff]  ;;  %s1345_s9 = smov 64   ;;  %vm152_vm5 = vcmask 261120   ;;  %vm1011_vm6 = vcmask 254976  }
  0x28   :  { %v51_v7 = vld [vmem:[%s1544_s0] sm:$0xff]  ;;  %v1418_v8 = vpack.c.bf16 %v149_v6, %v148_v4  ;;  %v151_v10 = vld [vmem:[%s1546_s2 + $0x18] sm:$0xff]  ;;  %v52_v11 = vld [vmem:[%s1544_s0 + $0x8] sm:$0xff] }
  0x29   :  { %1085 = vmatprep.mubr.msk.f32.mxu0 %vm62_vm4, %v51_v7  ;;  %1189 = vmatprep.subr.msk.bf16.mxu0 %vm1188_vm3, %v1187_v5  ;;  %v1431_v12 = vpack.c.bf16 %v151_v10, %v150_v9  ;;  %v1019_v13 = vld [vmem:[%s1547_s3] ss:$0 sm:$0xff]  ;;  %s1346_s3 = smov 32  }
  0x2a   :  { %1195 = vmatpush3.bf16.msra.mxu1 %v1418_v8  ;;  %1192 = vmatpush3.bf16.msk.msra.mxu0 %vm1188_vm3, %v1187_v5 }
  0x2b   :  { %1196 = vmatprep.subr.bf16.mxu1 %v1341_v0  ;;  %1199 = vmatprep.subr.bf16.mxu0 %v1341_v0 }
  0x2d   :  { %1086 = vmatmul.mubr.msk.f32.vlgmr.msra.gmra.mrb[0].mxu0 %vm62_vm4, %v52_v11 }
  0x2e   :  { %1198 = vmatpush3.bf16.msra.mxu1 %v1431_v12  ;;  %1201 = vmatpush3.bf16.msra.mxu0 %v1418_v8 }
  0x2f   :  { %1202 = vmatprep.subr.bf16.mxu0 %v1341_v0  ;;  %1107 = vmatprep.mubr.msk.f32.mxu0 %vm1342_vm0, %v1343_v1 }
  0x30   :  { %1205 = vmatprep.subr.bf16.mxu1 %v1341_v0 }
  0x31   :  { %1097 = vmatmul.mubr.f32.vlgmr.msra.gmra.mrb[0].mxu1 %v1343_v1 }
  0x32   :  { %1204 = vmatpush3.bf16.msra.mxu0 %v1431_v12  ;;  %1207 = vmatpush3.bf16.msra.mxu1 %v1418_v8 }
  0x33   :  { %1208 = vmatprep.subr.bf16.mxu1 %v1341_v0  ;;  %1118 = vmatprep.mubr.msk.f32.mxu1 %vm1342_vm0, %v1343_v1 }
  0x34   :  { %1211 = vmatprep.subr.bf16.mxu0 %v1341_v0 }
  0x36   :  { %1210 = vmatpush3.bf16.msra.mxu1 %v1431_v12 }
  0x37   :  { %1217 = vmatprep.subr.bf16.mxu1 %v1341_v0 }
 0x100   :  { %v1087_v14 = vpop.f32.mrb[0].mxu0 }
 0x101   :  { %v1454_v15 = vadd.f32 %v1087_v14, %v1019_v13  ;;  %v139_v16 = vpop.f32.mrb[1].mxu0 }
 0x102   :  { %v1456_v17 = vadd.f32 %v1019_v13, %v139_v16 }
 0x104   :  { %v222_v18 = vpop.f32.mrb[0].mxu1  ;;  %v250_v33 = vrot.slane %v1456_v17, 2  ;;  %v347_v49 = vrot.slane %v1456_v17, 4  ;;  %v444_v3 = vrot.slane %v1456_v17, 6 }
 0x105   :  { %v223_v19 = vadd.f32 %v222_v18, %v1456_v17  ;;  %v1098_v20 = vpop.f32.mrb[1].mxu1 }
 0x107   :  { %1257 = vtanh.f32 %v223_v19 }
 0x111   :  { %v1258_v21 = vpop.eup %1257 }
 0x112   :  { %231 = vrot.lane.b32.xlu0 %v1258_v21, %s1345_s9  ;;  %v227_v22 = vmul.f32 0.5, %v1258_v21 }
 0x114   :  { %v228_v23 = vadd.f32 0.5, %v227_v22 }
 0x116   :  { %v229_v26 = vmul.f32 0.0, %v228_v23 }
 0x184   :  { %v232_v24 = vpop.permute.xlu0 %231 }
 0x185   :  { %v234_v25 = vmul.f32 %v232_v24, %v228_v23 }
 0x187   :  { %236 = vrot.lane.b32.xlu0 %v234_v25, %s1346_s3 }
 0x1f9   :  { %v237_v27 = vpop.permute.xlu0 %236 }
 0x1fa   :  { %v239_v28 = vadd.f32 %v237_v27, %v229_v26 }
 0x1fc   :  { %1259 = vtanh.f32 %v239_v28 }
 0x206   :  { %v1260_v29 = vpop.eup %1259 }
 0x207   :  { %242 = vrot.lane.b32.xlu1 %v1260_v29, %s1345_s9 }
 0x279   :  { %v243_v30 = vpop.permute.xlu1 %242 }
 0x27a   :  { %v245_v31 = vmul.f32 %v243_v30, %v228_v23 }
 0x27c   :  { %247 = vrot.lane.b32.xlu1 %v245_v31, %s1346_s3 }
 0x2ee   :  { %v248_v32 = vpop.permute.xlu1 %247 }
 0x2ef   :  { %1108 = vmatmul.mubr.msk.f32.vlgmr.msra.gmra.mrb[2].mxu0 %vm152_vm5, %v248_v32 }
 0x2f0   :  { %1213 = vmatpush3.bf16.msra.mxu0 %v1418_v8  ;;  %1129 = vmatprep.mubr.msk.f32.mxu0 %vm1342_vm0, %v1343_v1 }
 0x2f1   :  { %1214 = vmatprep.subr.bf16.mxu0 %v1341_v0 }
 0x2f4   :  { %1216 = vmatpush3.bf16.msra.mxu0 %v1431_v12 }
 0x2f5   :  { %1223 = vmatprep.subr.bf16.mxu0 %v1341_v0 }
 0x3c2   :  { %v320_v34 = vpop.f32.mrb[2].mxu0 }
 0x3c3   :  { %v321_v35 = vadd.f32 %v320_v34, %v250_v33  ;;  %v1109_v36 = vpop.f32.mrb[3].mxu0 }
 0x3c5   :  { %1261 = vtanh.f32 %v321_v35 }
 0x3cf   :  { %v1262_v37 = vpop.eup %1261 }
 0x3d0   :  { %329 = vrot.lane.b32.xlu0 %v1262_v37, %s1345_s9  ;;  %v325_v38 = vmul.f32 0.5, %v1262_v37  ;;  %v637_v37 = vrot.slane %v1454_v15, 2 }
 0x3d2   :  { %v326_v39 = vadd.f32 0.5, %v325_v38 }
 0x3d4   :  { %v327_v42 = vmul.f32 %v326_v39, %v239_v28 }
 0x442   :  { %v330_v40 = vpop.permute.xlu0 %329 }
 0x443   :  { %v332_v41 = vmul.f32 %v330_v40, %v326_v39 }
 0x445   :  { %334 = vrot.lane.b32.xlu1 %v332_v41, %s1346_s3 }
 0x4b7   :  { %v335_v43 = vpop.permute.xlu1 %334 }
 0x4b8   :  { %v337_v44 = vadd.f32 %v335_v43, %v327_v42 }
 0x4ba   :  { %1263 = vtanh.f32 %v337_v44 }
 0x4c4   :  { %v1264_v45 = vpop.eup %1263 }
 0x4c5   :  { %340 = vrot.lane.b32.xlu0 %v1264_v45, %s1345_s9 }
 0x537   :  { %v341_v46 = vpop.permute.xlu0 %340 }
 0x538   :  { %v343_v47 = vmul.f32 %v341_v46, %v326_v39 }
 0x53a   :  { %345 = vrot.lane.b32.xlu1 %v343_v47, %s1346_s3 }
 0x5ac   :  { %v346_v48 = vpop.permute.xlu1 %345 }
 0x5ad   :  { %1119 = vmatmul.mubr.msk.f32.vlgmr.msra.gmra.mrb[2].mxu1 %vm152_vm5, %v346_v48 }
 0x5ae   :  { %1219 = vmatpush3.bf16.msra.mxu1 %v1418_v8  ;;  %1140 = vmatprep.mubr.msk.f32.mxu1 %vm1342_vm0, %v1343_v1 }
 0x5af   :  { %1220 = vmatprep.subr.bf16.mxu1 %v1341_v0 }
 0x5b2   :  { %1222 = vmatpush3.bf16.msra.mxu1 %v1431_v12 }
 0x5b3   :  { %1229 = vmatprep.subr.bf16.mxu1 %v1341_v0 }
 0x680   :  { %v417_v50 = vpop.f32.mrb[2].mxu1 }
 0x681   :  { %v418_v51 = vadd.f32 %v417_v50, %v347_v49  ;;  %v1120_v52 = vpop.f32.mrb[3].mxu1 }
 0x683   :  { %1265 = vtanh.f32 %v418_v51  ;;  %v734_v51 = vrot.slane %v1454_v15, 4 }
 0x68d   :  { %v1266_v53 = vpop.eup %1265 }
 0x68e   :  { %426 = vrot.lane.b32.xlu0 %v1266_v53, %s1345_s9  ;;  %v422_v54 = vmul.f32 0.5, %v1266_v53 }
 0x690   :  { %v423_v55 = vadd.f32 0.5, %v422_v54 }
 0x692   :  { %v424_v58 = vmul.f32 %v423_v55, %v337_v44 }
 0x700   :  { %v427_v56 = vpop.permute.xlu0 %426 }
 0x701   :  { %v429_v57 = vmul.f32 %v427_v56, %v423_v55 }
 0x703   :  { %431 = vrot.lane.b32.xlu1 %v429_v57, %s1346_s3 }
 0x775   :  { %v432_v59 = vpop.permute.xlu1 %431 }
 0x776   :  { %v434_v60 = vadd.f32 %v432_v59, %v424_v58 }
 0x778   :  { %1267 = vtanh.f32 %v434_v60 }
 0x782   :  { %v1268_v61 = vpop.eup %1267 }
 0x783   :  { %437 = vrot.lane.b32.xlu0 %v1268_v61, %s1345_s9 }
 0x7f5   :  { %v438_v62 = vpop.permute.xlu0 %437 }
 0x7f6   :  { %v440_v63 = vmul.f32 %v438_v62, %v423_v55 }
 0x7f8   :  { %442 = vrot.lane.b32.xlu1 %v440_v63, %s1346_s3 }
 0x86a   :  { %v443_v2 = vpop.permute.xlu1 %442 }
 0x86b   :  { %1130 = vmatmul.mubr.msk.f32.vlgmr.msra.gmra.mrb[4].mxu0 %vm152_vm5, %v443_v2 }
 0x86c   :  { %1225 = vmatpush3.bf16.msra.mxu0 %v1418_v8  ;;  %1151 = vmatprep.mubr.msk.f32.mxu0 %vm1342_vm0, %v1343_v1 }
 0x86d   :  { %1226 = vmatprep.subr.bf16.mxu0 %v1341_v0 }
 0x870   :  { %1228 = vmatpush3.bf16.msra.mxu0 %v1431_v12 }
 0x871   :  { %1235 = vmatprep.subr.bf16.mxu0 %v1341_v0 }
 0x93e   :  { %v514_v4 = vpop.f32.mrb[4].mxu0 }
 0x93f   :  { %v515_v5 = vadd.f32 %v514_v4, %v444_v3  ;;  %v1131_v6 = vpop.f32.mrb[5].mxu0  ;;  %v831_v4 = vrot.slane %v1454_v15, 6 }
 0x941   :  { %1269 = vtanh.f32 %v515_v5 }
 0x94b   :  { %v1270_v7 = vpop.eup %1269 }
 0x94c   :  { %523 = vrot.lane.b32.xlu0 %v1270_v7, %s1345_s9  ;;  %v519_v9 = vmul.f32 0.5, %v1270_v7 }
 0x94e   :  { %v520_v10 = vadd.f32 0.5, %v519_v9 }
 0x950   :  { %v521_v14 = vmul.f32 %v520_v10, %v434_v60 }
 0x9be   :  { %v524_v11 = vpop.permute.xlu0 %523 }
 0x9bf   :  { %v526_v13 = vmul.f32 %v524_v11, %v520_v10 }
 0x9c1   :  { %528 = vrot.lane.b32.xlu1 %v526_v13, %s1346_s3 }
 0xa33   :  { %v529_v16 = vpop.permute.xlu1 %528 }
 0xa34   :  { %v531_v18 = vadd.f32 %v529_v16, %v521_v14 }
 0xa36   :  { %1271 = vtanh.f32 %v531_v18 }
 0xa40   :  { %v1272_v19 = vpop.eup %1271 }
 0xa41   :  { %534 = vrot.lane.b32.xlu0 %v1272_v19, %s1345_s9 }
 0xab3   :  { %v535_v17 = vpop.permute.xlu0 %534 }
 0xab4   :  { %v537_v20 = vmul.f32 %v535_v17, %v520_v10  ;;  %v925_v17 = vld [vmem:[#allocation4] sm:$0xff] }
 0xab6   :  { %539 = vrot.lane.b32.xlu1 %v537_v20, %s1346_s3  ;;  %v926_v20 = vld [vmem:[#allocation4 + $0x8] sm:$0xff] }
 0xb28   :  { %v540_v21 = vpop.permute.xlu1 %539 }
 0xb29   :  { %1141 = vmatmul.mubr.msk.f32.vlgmr.msra.gmra.mrb[4].mxu1 %vm152_vm5, %v540_v21  ;;  %v1242_v21 = vpack.c.bf16 %v926_v20, %v925_v17 }
 0xb2a   :  { %1231 = vmatpush3.bf16.msra.mxu1 %v1418_v8  ;;  %1162 = vmatprep.mubr.msk.f32.mxu1 %vm1342_vm0, %v1343_v1 }
 0xb2b   :  { %1232 = vmatprep.subr.bf16.mxu1 %v1341_v0 }
 0xb2e   :  { %1234 = vmatpush3.bf16.msra.mxu1 %v1431_v12 }
 0xb2f   :  { %1241 = vmatprep.subr.bf16.mxu1 %v1341_v0 }
 0xbfc   :  { %v609_v22 = vpop.f32.mrb[4].mxu1 }
 0xbfd   :  { %v610_v23 = vadd.f32 %v609_v22, %v1454_v15  ;;  %v1142_v24 = vpop.f32.mrb[5].mxu1  ;;  %v927_v15 = vld [vmem:[#allocation4 + $0x10] sm:$0xff]  ;;  %v928_v22 = vld [vmem:[#allocation4 + $0x18] sm:$0xff] }
 0xbff   :  { %1273 = vtanh.f32 %v610_v23  ;;  %v1245_v23 = vpack.c.bf16 %v928_v22, %v927_v15 }
 0xc09   :  { %v1274_v25 = vpop.eup %1273 }
 0xc0a   :  { %618 = vrot.lane.b32.xlu0 %v1274_v25, %s1345_s9  ;;  %v614_v26 = vmul.f32 0.5, %v1274_v25 }
 0xc0c   :  { %v615_v27 = vadd.f32 0.5, %v614_v26 }
 0xc0e   :  { %v616_v30 = vmul.f32 %v615_v27, %v531_v18 }
 0xc7c   :  { %v619_v28 = vpop.permute.xlu0 %618 }
 0xc7d   :  { %v621_v29 = vmul.f32 %v619_v28, %v615_v27  ;;  %v1030_v28 = vld [vmem:[%s1549_s5] ss:$0 sm:$0xff] }
 0xc7f   :  { %623 = vrot.lane.b32.xlu1 %v621_v29, %s1346_s3 }
 0xcf1   :  { %v624_v31 = vpop.permute.xlu1 %623 }
 0xcf2   :  { %v626_v32 = vadd.f32 %v624_v31, %v616_v30 }
 0xcf4   :  { %1275 = vtanh.f32 %v626_v32 }
 0xcfe   :  { %v1276_v33 = vpop.eup %1275 }
 0xcff   :  { %629 = vrot.lane.b32.xlu0 %v1276_v33, %s1345_s9 }
 0xd71   :  { %v630_v34 = vpop.permute.xlu0 %629 }
 0xd72   :  { %v632_v35 = vmul.f32 %v630_v34, %v615_v27 }
 0xd74   :  { %634 = vrot.lane.b32.xlu1 %v632_v35, %s1346_s3 }
 0xde6   :  { %v635_v36 = vpop.permute.xlu1 %634 }
 0xde7   :  { %1152 = vmatmul.mubr.msk.f32.vlgmr.msra.gmra.mrb[6].mxu0 %vm152_vm5, %v635_v36 }
 0xde8   :  { %1237 = vmatpush3.bf16.msra.mxu0 %v1418_v8  ;;  %1173 = vmatprep.mubr.msk.f32.mxu0 %vm1342_vm0, %v1343_v1 }
 0xde9   :  { %1238 = vmatprep.subr.bf16.mxu0 %v1341_v0 }
 0xdec   :  { %1240 = vmatpush3.bf16.msra.mxu0 %v1431_v12 }
 0xeba   :  { %v707_v38 = vpop.f32.mrb[6].mxu0 }
 0xebb   :  { %v708_v39 = vadd.f32 %v707_v38, %v637_v37  ;;  %v1153_v40 = vpop.f32.mrb[7].mxu0 }
 0xebd   :  { %1277 = vtanh.f32 %v708_v39 }
 0xec7   :  { %v1278_v41 = vpop.eup %1277 }
 0xec8   :  { %716 = vrot.lane.b32.xlu0 %v1278_v41, %s1345_s9  ;;  %v712_v42 = vmul.f32 0.5, %v1278_v41 }
 0xeca   :  { %v713_v43 = vadd.f32 0.5, %v712_v42 }
 0xecc   :  { %v714_v45 = vmul.f32 %v713_v43, %v626_v32 }
 0xf3a   :  { %v717_v44 = vpop.permute.xlu0 %716 }
 0xf3b   :  { %v719_v8 = vmul.f32 %v717_v44, %v713_v43 }
 0xf3d   :  { %721 = vrot.lane.b32.xlu1 %v719_v8, %s1346_s3 }
 0xfaf   :  { %v722_v46 = vpop.permute.xlu1 %721 }
 0xfb0   :  { %v724_v47 = vadd.f32 %v722_v46, %v714_v45 }
 0xfb2   :  { %1279 = vtanh.f32 %v724_v47 }
 0xfbc   :  { %v1280_v12 = vpop.eup %1279 }
 0xfbd   :  { %727 = vrot.lane.b32.xlu0 %v1280_v12, %s1345_s9 }
0x102f   :  { %v728_v48 = vpop.permute.xlu0 %727 }
0x1030   :  { %v730_v49 = vmul.f32 %v728_v48, %v713_v43 }
0x1032   :  { %732 = vrot.lane.b32.xlu1 %v730_v49, %s1346_s3 }
0x10a4   :  { %v733_v50 = vpop.permute.xlu1 %732 }
0x10a5   :  { %1163 = vmatmul.mubr.msk.f32.vlgmr.msra.gmra.mrb[6].mxu1 %vm152_vm5, %v733_v50 }
0x10a6   :  { %1184 = vmatprep.mubr.msk.f32.mxu1 %vm1342_vm0, %v1343_v1  ;;  %1243 = vmatpush3.bf16.msra.mxu1 %v1242_v21 }
0x10a7   :  { %1244 = vmatprep.subr.bf16.mxu1 %v1341_v0 }
0x10aa   :  { %1246 = vmatpush3.bf16.msra.mxu1 %v1245_v23 }
0x1178   :  { %v804_v52 = vpop.f32.mrb[6].mxu1 }
0x1179   :  { %v805_v53 = vadd.f32 %v804_v52, %v734_v51  ;;  %v1164_v54 = vpop.f32.mrb[7].mxu1 }
0x117b   :  { %1281 = vtanh.f32 %v805_v53 }
0x1185   :  { %v1282_v55 = vpop.eup %1281 }
0x1186   :  { %813 = vrot.lane.b32.xlu0 %v1282_v55, %s1345_s9  ;;  %v809_v56 = vmul.f32 0.5, %v1282_v55 }
0x1188   :  { %v810_v57 = vadd.f32 0.5, %v809_v56 }
0x118a   :  { %v811_v60 = vmul.f32 %v810_v57, %v724_v47 }
0x11f8   :  { %v814_v58 = vpop.permute.xlu0 %813 }
0x11f9   :  { %v816_v59 = vmul.f32 %v814_v58, %v810_v57 }
0x11fb   :  { %818 = vrot.lane.b32.xlu1 %v816_v59, %s1346_s3 }
0x126d   :  { %v819_v61 = vpop.permute.xlu1 %818 }
0x126e   :  { %v821_v62 = vadd.f32 %v819_v61, %v811_v60 }
0x1270   :  { %1283 = vtanh.f32 %v821_v62 }
0x127a   :  { %v1284_v1 = vpop.eup %1283 }
0x127b   :  { %824 = vrot.lane.b32.xlu0 %v1284_v1, %s1345_s9 }
0x12ed   :  { %v825_v63 = vpop.permute.xlu0 %824 }
0x12ee   :  { %v827_v2 = vmul.f32 %v825_v63, %v810_v57 }
0x12f0   :  { %829 = vrot.lane.b32.xlu1 %v827_v2, %s1346_s3 }
0x1362   :  { %v830_v3 = vpop.permute.xlu1 %829 }
0x1363   :  { %1174 = vmatmul.mubr.msk.f32.vlgmr.msra.gmra.mrb[8].mxu0 %vm152_vm5, %v830_v3 }
0x1436   :  { %v901_v5 = vpop.f32.mrb[8].mxu0 }
0x1437   :  { %v902_v6 = vadd.f32 %v901_v5, %v831_v4  ;;  %v1175_v7 = vpop.f32.mrb[9].mxu0 }
0x1439   :  { %1285 = vtanh.f32 %v902_v6 }
0x1443   :  { %v1286_v9 = vpop.eup %1285 }
0x1444   :  { %910 = vrot.lane.b32.xlu0 %v1286_v9, %s1345_s9  ;;  %v906_v10 = vmul.f32 0.5, %v1286_v9 }
0x1446   :  { %v907_v11 = vadd.f32 0.5, %v906_v10 }
0x1448   :  { %v908_v16 = vmul.f32 %v907_v11, %v821_v62 }
0x14b6   :  { %v911_v13 = vpop.permute.xlu0 %910 }
0x14b7   :  { %v913_v14 = vmul.f32 %v911_v13, %v907_v11 }
0x14b9   :  { %915 = vrot.lane.b32.xlu1 %v913_v14, %s1346_s3 }
0x152b   :  { %v916_v18 = vpop.permute.xlu1 %915 }
0x152c   :  { %v918_v19 = vadd.f32 %v916_v18, %v908_v16 }
0x152e   :  { %1287 = vtanh.f32 %v918_v19 }
0x1538   :  { %v1288_v24 = vpop.eup %1287 }
0x1539   :  { %921 = vrot.lane.b32.xlu0 %v1288_v24, %s1345_s9 }
0x15ab   :  { %v922_v25 = vpop.permute.xlu0 %921 }
0x15ac   :  { %v924_v26 = vmul.f32 %v922_v25, %v907_v11 }
0x15ae   :  { %937 = vrot.lane.b32.xlu1 %v924_v26, %s1346_s3 }
0x1620   :  { %v938_v27 = vpop.permute.xlu1 %937 }
0x1621   :  { %1185 = vmatmul.mubr.msk.f32.vlgmr.msra.gmra.mrb[8].mxu1 %vm152_vm5, %v938_v27 }
0x16f4   :  { %v1007_v29 = vpop.f32.mrb[8].mxu1 }
0x16f5   :  { %v1008_v30 = vadd.f32 %v1030_v28, %v1007_v29  ;;  %v1186_v31 = vpop.f32.mrb[9].mxu1 }
0x16f7   :  { %1012 = vst.msk [vmem:[%s1550_s6] sm:$0x3] %vm1011_vm6, %v1008_v30 }
0x16f8   :  { %1017 = vsyncpa [#allocation3], 1 }
0x16f9   :  { %1018 = vsyncpa [#allocation5], 1 }

</bundles_post_ra>
